<compile_context>
chip_gen: v7x
topology: tpu7x:2x2x1
jax: 0.10.0
libtpu: 0.0.40
codegen_flags: <defaults>
</compile_context>

<pallas_src>
import functools

import jax
import jax.numpy as jnp
from jax.experimental import pallas as pl
from jax.experimental.pallas import tpu as pltpu

_LANE = 128


def _round_up(a, m):
    return ((a + m - 1) // m) * m


def _sublane(dtype):
    # sublane tile height for the (sub, 128) layout constraint
    return {4: 8, 2: 16, 1: 32}[jnp.dtype(dtype).itemsize]


def _mlp_kernel(*refs, num_layers):
    """Fused MLP: num_layers x (matmul + bias + ReLU) on one row tile.

    refs = (x_ref, w0_ref, b0_ref, w1_ref, b1_ref, ..., o_ref)
    """
    x_ref = refs[0]
    o_ref = refs[-1]
    param_refs = refs[1:-1]

    h = x_ref[...]                                    # native dtype -> MXU
    for layer in range(num_layers):
        w = param_refs[2 * layer][...]
        b = param_refs[2 * layer + 1][...]            # (1, H) broadcasts over rows
        h = jnp.dot(h, w, preferred_element_type=jnp.float32)   # f32 accumulate
        h = jnp.maximum(h + b.astype(jnp.float32), 0.0)          # bias + ReLU
        if layer < num_layers - 1:
            h = h.astype(x_ref.dtype)                 # next dot in storage dtype
    o_ref[...] = h.astype(o_ref.dtype)


def encoder_forward(x, weights, biases, *, row_tile=4096):
    """Applies the Encoder MLP to x of shape (B, T, F).

    weights[i]: (in_i, out_i) ; biases[i]: (out_i,)
    Returns (B, T, hidden_sizes[-1]).
    """
    assert len(weights) == len(biases)
    num_layers = len(weights)
    B, T, F = x.shape
    M = B * T
    out_dim = int(weights[-1].shape[1])
    dtype = x.dtype
    dsize = jnp.dtype(dtype).itemsize
    sub = _sublane(dtype)

    # ---- row-packing factor: P logical rows per lane-dense physical row.
    max_dim = max([F] + [int(w.shape[1]) for w in weights])
    P = _LANE // F if (0 < F < _LANE and _LANE % F == 0) else 1
    P = max(1, min(P, max(1, 512 // max_dim)))   # keep block-diag weights small

    Fp = P * F
    Op = P * out_dim

    # ---- packed params: block-diagonal weights, tiled biases (exact math).
    flat_params = []
    for w, b in zip(weights, biases):
        if P > 1:
            w = jnp.kron(jnp.eye(P, dtype=w.dtype), w)   # (P*k, P*n) block diag
            b = jnp.tile(b, P)
        flat_params.append(w)
        flat_params.append(b.reshape(1, -1))

    # ---- pack the rows (contiguous reshape; free for row-major f32).
    x2 = x.reshape(M, F)
    Mp = pl.cdiv(M, P)
    if Mp * P != M:
        x2 = jnp.pad(x2, ((0, Mp * P - M), (0, 0)))
    xp = x2.reshape(Mp, Fp)

    # ---- row tiling: big tile, dtype-aware sublane alignment, VMEM-capped.
    row_bytes = (Fp + Op) * dsize
    tm = min(int(row_tile), _round_up(Mp, sub))
    tm = max(sub, _round_up(tm, sub))
    tm_cap = max(sub, ((14 << 20) // max(row_bytes, 1)) // sub * sub)
    tm = min(tm, tm_cap)                     # ~28 MiB double-buffered ceiling
    # Give the parallel axis >= 4 steps when rows allow (>= 2 per TC on v7x).
    if _round_up(Mp, tm) // tm < 4 and Mp >= 4 * sub:
        tm = min(tm, max(sub, _round_up(pl.cdiv(Mp, 4), sub)))
    Mp_pad = _round_up(Mp, tm)
    if Mp_pad != Mp:
        xp = jnp.pad(xp, ((0, Mp_pad - Mp), (0, 0)))

    # ---- BlockSpecs: tile rows of x / out; params resident full blocks.
    in_specs = [pl.BlockSpec((tm, Fp), lambda i: (i, 0))]
    for li in range(num_layers):
        w = flat_params[2 * li]
        b2 = flat_params[2 * li + 1]
        in_specs.append(pl.BlockSpec(w.shape, lambda i: (0, 0)))
        in_specs.append(pl.BlockSpec(b2.shape, lambda i: (0, 0)))
    out_spec = pl.BlockSpec((tm, Op), lambda i: (i, 0))

    # ---- explicit VMEM budget (v5e default scoped is only 16 MiB).
    param_bytes = sum(int(p.size) * jnp.dtype(p.dtype).itemsize
                      for p in flat_params)
    vmem_needed = 2 * tm * row_bytes + 2 * param_bytes + (4 << 20)
    vmem_limit = int(min(max(vmem_needed, 32 << 20), 48 << 20))

    # ---- advisory cost estimate reflecting the packed layout's real traffic.
    flops = 2 * Mp_pad * sum(
        int(flat_params[2 * li].shape[0]) * int(flat_params[2 * li].shape[1])
        for li in range(num_layers))
    bytes_accessed = Mp_pad * row_bytes + param_bytes
    cost = pl.CostEstimate(flops=flops, transcendentals=0,
                           bytes_accessed=bytes_accessed)

    kernel = functools.partial(_mlp_kernel, num_layers=num_layers)

    yp = pl.pallas_call(
        kernel,
        out_shape=jax.ShapeDtypeStruct((Mp_pad, Op), dtype),
        grid_spec=pltpu.PrefetchScalarGridSpec(
            num_scalar_prefetch=0,
            grid=(Mp_pad // tm,),
            in_specs=in_specs,
            out_specs=out_spec,
        ),
        compiler_params=pltpu.CompilerParams(
            dimension_semantics=("parallel",),
            vmem_limit_bytes=vmem_limit,
        ),
        cost_estimate=cost,
    )(xp, *flat_params)

    # ---- unpack: (Mp_pad, P*out) -> (M, out) -> (B, T, out); contiguous.
    y = yp[:Mp].reshape(Mp * P, out_dim)[:M]
    return y.reshape(B, T, out_dim)


def init_encoder_params(key, input_size, hidden_sizes, dtype=jnp.float32):
    """Deterministic synthetic init matching nn.Linear shapes (stored transposed)."""
    weights, biases = [], []
    sizes = [input_size] + list(hidden_sizes)
    for i in range(len(hidden_sizes)):
        key, kw, kb = jax.random.split(key, 3)
        fan_in, fan_out = sizes[i], sizes[i + 1]
        bound = 1.0 / (fan_in ** 0.5)
        # PyTorch nn.Linear weight is (out, in); we store (in, out) for x @ W.
        w = jax.random.uniform(kw, (fan_in, fan_out), dtype, -bound, bound)
        b = jax.random.uniform(kb, (fan_out,), dtype, -bound, bound)
        weights.append(w)
        biases.append(b)
    return weights, biases


def encoder_reference(x, weights, biases):
    """Plain-JAX reference matching the PyTorch forward."""
    B, T, F = x.shape
    h = x.reshape(-1, F)
    for w, b in zip(weights, biases):
        h = jnp.maximum(jnp.dot(h, w, preferred_element_type=jnp.float32) + b, 0.0)
        h = h.astype(x.dtype)
    return h.reshape(B, T, -1)


if __name__ == "__main__":
    key = jax.random.PRNGKey(0)
    key, kx = jax.random.split(key)

    # Small shapes consistent with the module: (batch, time_steps, features)
    B, T, F = 2, 8, 16
    hidden_sizes = [32, 32]

    x = jax.random.normal(kx, (B, T, F), dtype=jnp.float32)
    weights, biases = init_encoder_params(key, F, hidden_sizes)

    y = encoder_forward(x, weights, biases)
    y = jax.block_until_ready(y)

    y_ref = encoder_reference(x, weights, biases)
    assert y.shape == (B, T, hidden_sizes[-1]), y.shape
    assert jnp.allclose(y, y_ref, atol=1e-5, rtol=1e-5), "mismatch vs reference"

    print("KERNEL_OK")
</pallas_src>

<mosaic_0001>
module attributes {stable_mosaic.version = 11 : i64} {
  func.func @_mlp_kernel(%arg0: i32, %arg1: memref<8x128xf32, #tpu.memory_space<vmem>>, %arg2: memref<128x256xf32, #tpu.memory_space<vmem>>, %arg3: memref<1x256xf32, #tpu.memory_space<vmem>>, %arg4: memref<256x256xf32, #tpu.memory_space<vmem>>, %arg5: memref<1x256xf32, #tpu.memory_space<vmem>>, %arg6: memref<8x256xf32, #tpu.memory_space<vmem>>) attributes {dimension_semantics = [#tpu.dimension_semantics<parallel>], iteration_bounds = array<i64: 1>, scalar_prefetch = 0 : i64, scratch_operands = 0 : i64, tpu.core_type = #tpu.core_type<tc>, window_params = [{transform_indices = @transform_0, window_bounds = array<i64: 8, 128>}, {pipeline_mode = #tpu.pipeline_mode<synchronous>, transform_indices = @transform_1, window_bounds = array<i64: 128, 256>}, {pipeline_mode = #tpu.pipeline_mode<synchronous>, transform_indices = @transform_2, window_bounds = array<i64: 1, 256>}, {pipeline_mode = #tpu.pipeline_mode<synchronous>, transform_indices = @transform_3, window_bounds = array<i64: 256, 256>}, {pipeline_mode = #tpu.pipeline_mode<synchronous>, transform_indices = @transform_4, window_bounds = array<i64: 1, 256>}, {transform_indices = @transform_5, window_bounds = array<i64: 8, 256>}]} {
    %c0 = arith.constant 0 : index
    %c0_0 = arith.constant 0 : index
    %0 = vector.load %arg1[%c0, %c0_0] : memref<8x128xf32, #tpu.memory_space<vmem>>, vector<8x128xf32>
    %c0_1 = arith.constant 0 : index
    %c0_2 = arith.constant 0 : index
    %1 = vector.load %arg2[%c0_1, %c0_2] : memref<128x256xf32, #tpu.memory_space<vmem>>, vector<128x256xf32>
    %c0_3 = arith.constant 0 : index
    %c0_4 = arith.constant 0 : index
    %2 = vector.load %arg3[%c0_3, %c0_4] : memref<1x256xf32, #tpu.memory_space<vmem>>, vector<1x256xf32>
    %cst = arith.constant dense<0.000000e+00> : vector<8x256xf32>
    %3 = tpu.matmul %0, %1, %cst {dimension_numbers = #tpu.dot_dimension_numbers<[1], [0], [0], [1], [0, 0, 1, 1], [], []>} : vector<8x128xf32>, vector<128x256xf32>, vector<8x256xf32> -> vector<8x256xf32>
    %4 = vector.broadcast %2 : vector<1x256xf32> to vector<8x256xf32>
    %5 = arith.addf %3, %4 : vector<8x256xf32>
    %cst_5 = arith.constant 0.000000e+00 : f32
    %6 = vector.broadcast %cst_5 : f32 to vector<8x256xf32>
    %7 = arith.maximumf %5, %6 : vector<8x256xf32>
    %c0_6 = arith.constant 0 : index
    %c0_7 = arith.constant 0 : index
    %8 = vector.load %arg4[%c0_6, %c0_7] : memref<256x256xf32, #tpu.memory_space<vmem>>, vector<256x256xf32>
    %c0_8 = arith.constant 0 : index
    %c0_9 = arith.constant 0 : index
    %9 = vector.load %arg5[%c0_8, %c0_9] : memref<1x256xf32, #tpu.memory_space<vmem>>, vector<1x256xf32>
    %cst_10 = arith.constant dense<0.000000e+00> : vector<8x256xf32>
    %10 = tpu.matmul %7, %8, %cst_10 {dimension_numbers = #tpu.dot_dimension_numbers<[1], [0], [0], [1], [0, 0, 1, 1], [], []>} : vector<8x256xf32>, vector<256x256xf32>, vector<8x256xf32> -> vector<8x256xf32>
    %11 = vector.broadcast %9 : vector<1x256xf32> to vector<8x256xf32>
    %12 = arith.addf %10, %11 : vector<8x256xf32>
    %cst_11 = arith.constant 0.000000e+00 : f32
    %13 = vector.broadcast %cst_11 : f32 to vector<8x256xf32>
    %14 = arith.maximumf %12, %13 : vector<8x256xf32>
    %c0_12 = arith.constant 0 : index
    %c0_13 = arith.constant 0 : index
    %15 = vector.load %arg6[%c0_12, %c0_13] : memref<8x256xf32, #tpu.memory_space<vmem>>, vector<8x256xf32>
    tpu.vector_store %arg6[%c0_12, %c0_13], %14 {strides = array<i32>} : memref<8x256xf32, #tpu.memory_space<vmem>>, vector<8x256xf32>,
    return
  }
  func.func @transform_0(%arg0: i32) -> (i32, i32) {
    %c0_i32 = arith.constant 0 : i32
    %c0_i32_0 = arith.constant 0 : i32
    return %arg0, %c0_i32 : i32, i32
  }
  func.func @transform_1(%arg0: i32) -> (i32, i32) {
    %c0_i32 = arith.constant 0 : i32
    %c0_i32_0 = arith.constant 0 : i32
    %c0_i32_1 = arith.constant 0 : i32
    return %c0_i32, %c0_i32_0 : i32, i32
  }
  func.func @transform_2(%arg0: i32) -> (i32, i32) {
    %c0_i32 = arith.constant 0 : i32
    %c0_i32_0 = arith.constant 0 : i32
    %c0_i32_1 = arith.constant 0 : i32
    return %c0_i32, %c0_i32_0 : i32, i32
  }
  func.func @transform_3(%arg0: i32) -> (i32, i32) {
    %c0_i32 = arith.constant 0 : i32
    %c0_i32_0 = arith.constant 0 : i32
    %c0_i32_1 = arith.constant 0 : i32
    return %c0_i32, %c0_i32_0 : i32, i32
  }
  func.func @transform_4(%arg0: i32) -> (i32, i32) {
    %c0_i32 = arith.constant 0 : i32
    %c0_i32_0 = arith.constant 0 : i32
    %c0_i32_1 = arith.constant 0 : i32
    return %c0_i32, %c0_i32_0 : i32, i32
  }
  func.func @transform_5(%arg0: i32) -> (i32, i32) {
    %c0_i32 = arith.constant 0 : i32
    %c0_i32_0 = arith.constant 0 : i32
    return %arg0, %c0_i32 : i32, i32
  }
}

</mosaic_0001>

<bundles_post_ra>
// kernel: tpu_custom_call.1
= control target key start
LH: loop header
LB: loop body
LE: loop exit
PB: predicated region body
PF: predicated region fallthrough
CT: control target
= control target key end

     0   :  { %10 = vsyncpa [#allocation3], 0  ;;  %s639_s0 = inlined_call_operand.hbm [shape: f32[8,128], index: 0, kind: input, shape index: {}]   ;;  %s640_s1 = inlined_call_operand.hbm [shape: f32[128,256], index: 1, kind: input, shape index: {}]   ;;  %s641_s2 = inlined_call_operand.vmem [shape: f32[1,256], index: 2, kind: input, shape index: {}]   ;;  %s642_s3 = inlined_call_operand.hbm [shape: f32[256,256], index: 3, kind: input, shape index: {}]   ;;  %s643_s4 = inlined_call_operand.vmem [shape: f32[1,256], index: 4, kind: input, shape index: {}]   ;;  %s644_s5 = inlined_call_operand.hbm [shape: f32[8,256], index: 5, kind: output, shape index: {}]  }
   0x1   :  { %11 = vsyncpa [#allocation6], 0 }
   0x2   :  { %12 = vsyncpa [#allocation4], 0  ;;  %s542_s18 = smov [#allocation5]   ;;  %s448_s22 = scalar_lea.hbm %s640_s1, 4096 }
   0x3   :  { %s28_s19 = sshll.u32 %s542_s18, 4  ;;  %p449_p0 = scmp.ne.s32.totalorder %s640_s1, %s448_s22  ;;  %s29_s19 = int_to_ptr.vmem [resolvable:$true] %s28_s19 }
   0x4   :  { %p452_p1 = scmp.lt.u32.totalorder %s448_s22, %s640_s1 }
   0x6   :  { %p454_p2 = pnand %p452_p1, %p449_p0 }
   0x8   :  { %457 = shalt.err (!%p454_p2)
}
   0x9   :  { %s458_s27 = scalar_lea.vmem %s29_s19, 4096  ;;  %p463_p4 = scmp.lt.s32.totalorder %s29_s19, %s29_s19 }
   0xa   :  { %p459_p3 = scmp.ne.s32.totalorder %s29_s19, %s458_s27  ;;  %p464_p5 = scmp.lt.s32.totalorder %s458_s27, %s458_s27 }
   0xc   :  { %p465_p6 = por %p464_p5, %p463_p4 }
   0xe   :  { %p466_p7 = pnand %p465_p6, %p459_p3 }
  0x10   :  { %469 = shalt.err (!%p466_p7)
}
  0x11   :  { %s543_s28 = smov 256   ;;  %s544_s29 = smov 16  }
  0x12   :  { %34 = dma.hbm_to_vmem [thread:$0]  %s640_s1, 4096, %s29_s19, [#allocation6], %s543_s28, %s543_s28, %s544_s29  }
  0x13   :  { %s545_s7 = smov [#allocation2]   ;;  %s546_s9 = smov [#allocation7]  }
  0x14   :  { %s19_s8 = sshll.u32 %s545_s7, 4  ;;  %s42_s10 = sshll.u32 %s546_s9, 4  ;;  %s20_s8 = int_to_ptr.vmem [resolvable:$true] %s19_s8  ;;  %s43_s10 = int_to_ptr.vmem [resolvable:$true] %s42_s10 }
  0x15   :  { %s470_s13 = scalar_lea.hbm %s639_s0, 128 }
  0x16   :  { %p471_p8 = scmp.ne.s32.totalorder %s639_s0, %s470_s13  ;;  %p474_p9 = scmp.lt.u32.totalorder %s470_s13, %s639_s0 }
  0x18   :  { %p476_p10 = pnand %p474_p9, %p471_p8 }
  0x1a   :  { %479 = shalt.err (!%p476_p10)
}
  0x1b   :  { %s480_s1 = scalar_lea.vmem %s20_s8, 128  ;;  %p485_p12 = scmp.lt.s32.totalorder %s20_s8, %s20_s8 }
  0x1c   :  { %p481_p11 = scmp.ne.s32.totalorder %s20_s8, %s480_s1  ;;  %p486_p13 = scmp.lt.s32.totalorder %s480_s1, %s480_s1 }
  0x1e   :  { %p487_p0 = por %p486_p13, %p485_p12 }
  0x20   :  { %p488_p1 = pnand %p487_p0, %p481_p11 }
  0x22   :  { %491 = shalt.err (!%p488_p1)
}
  0x23   :  { %22 = dma.hbm_to_vmem [thread:$0]  %s639_s0, 128, %s20_s8, [#allocation3]  }
  0x24   :  { %s492_s22 = scalar_lea.hbm %s642_s3, 8192 }
  0x25   :  { %p493_p2 = scmp.ne.s32.totalorder %s642_s3, %s492_s22  ;;  %p496_p3 = scmp.lt.u32.totalorder %s492_s22, %s642_s3 }
  0x27   :  { %p498_p4 = pnand %p496_p3, %p493_p2 }
  0x29   :  { %501 = shalt.err (!%p498_p4)
}
  0x2a   :  { %s502_s27 = scalar_lea.vmem %s43_s10, 8192  ;;  %p507_p6 = scmp.lt.s32.totalorder %s43_s10, %s43_s10 }
  0x2b   :  { %p503_p5 = scmp.ne.s32.totalorder %s43_s10, %s502_s27  ;;  %p508_p7 = scmp.lt.s32.totalorder %s502_s27, %s502_s27 }
  0x2d   :  { %p509_p8 = por %p508_p7, %p507_p6 }
  0x2f   :  { %p510_p9 = pnand %p509_p8, %p503_p5 }
  0x31   :  { %513 = shalt.err (!%p510_p9)
}
  0x32   :  { %48 = dma.hbm_to_vmem [thread:$0]  %s642_s3, 8192, %s43_s10, [#allocation6], %s543_s28, %s543_s28, %s544_s29  }
  0x33   :  { %536 = dma.done.wait [#allocation3], 128  }
  0x34   :  { %537 = vsyncadd [#allocation3], 4294967168 }
  0x35   :  { %538 = dma.done.wait [#allocation6], 12288  }
  0x36   :  { %539 = vsyncadd [#allocation6], 4294955008  ;;  %v547_v0 = vmov 0.0   ;;  %v62_v1 = vld [vmem:[#allocation5 + $0x8] sm:$0xff]  ;;  %v64_v2 = vld [vmem:[#allocation5 + $0x18] sm:$0xff] }
  0x37   :  { %169 = vmatprep.mubr.f32.mxu0 %v547_v0  ;;  %v61_v3 = vld [vmem:[#allocation5] sm:$0xff]  ;;  %v345_v4 = vpack.c.bf16 %v64_v2, %v62_v1  ;;  %v63_v5 = vld [vmem:[#allocation5 + $0x10] sm:$0xff]  ;;  %v66_v6 = vld [vmem:[#allocation5 + $0x28] sm:$0xff] }
  0x38   :  { %v68_v7 = vld [vmem:[#allocation5 + $0x38] sm:$0xff]  ;;  %v347_v8 = vpack.c.bf16 %v63_v5, %v61_v3  ;;  %v65_v10 = vld [vmem:[#allocation5 + $0x20] sm:$0xff]  ;;  %v67_v11 = vld [vmem:[#allocation5 + $0x30] sm:$0xff] }
  0x39   :  { %v349_v9 = vpack.c.bf16 %v68_v7, %v66_v6  ;;  %v70_v12 = vld [vmem:[#allocation5 + $0x48] sm:$0xff]  ;;  %346 = vmatprep.subr.bf16.mxu0 %v345_v4  ;;  %v72_v13 = vld [vmem:[#allocation5 + $0x58] sm:$0xff]  ;;  %v351_v14 = vpack.c.bf16 %v67_v11, %v65_v10  ;;  %v69_v16 = vld [vmem:[#allocation5 + $0x40] sm:$0xff] }
  0x3a   :  { %348 = vmatpush1.bf16.msra.mxu0 %v347_v8  ;;  %v353_v15 = vpack.c.bf16 %v72_v13, %v70_v12  ;;  %v71_v17 = vld [vmem:[#allocation5 + $0x50] sm:$0xff]  ;;  %v74_v18 = vld [vmem:[#allocation5 + $0x68] sm:$0xff]  ;;  %v76_v19 = vld [vmem:[#allocation5 + $0x78] sm:$0xff] }
  0x3b   :  { %350 = vmatprep.subr.bf16.mxu0 %v349_v9  ;;  %v355_v20 = vpack.c.bf16 %v71_v17, %v69_v16  ;;  %v357_v21 = vpack.c.bf16 %v76_v19, %v74_v18  ;;  %v73_v22 = vld [vmem:[#allocation5 + $0x60] sm:$0xff]  ;;  %v75_v23 = vld [vmem:[#allocation5 + $0x70] sm:$0xff]  ;;  %v78_v24 = vld [vmem:[#allocation5 + $0x88] sm:$0xff] }
  0x3c   :  { %v80_v25 = vld [vmem:[#allocation5 + $0x98] sm:$0xff]  ;;  %v77_v26 = vld [vmem:[#allocation5 + $0x80] sm:$0xff]  ;;  %v79_v27 = vld [vmem:[#allocation5 + $0x90] sm:$0xff]  ;;  %v359_v31 = vpack.c.bf16 %v75_v23, %v73_v22 }
  0x3d   :  { %v179_v28 = vld [vmem:[#allocation7 + $0x8] sm:$0xff]  ;;  %v181_v29 = vld [vmem:[#allocation7 + $0x18] sm:$0xff]  ;;  %v178_v30 = vld [vmem:[#allocation7] sm:$0xff]  ;;  %v361_v36 = vpack.c.bf16 %v80_v25, %v78_v24  ;;  %v363_v46 = vpack.c.bf16 %v79_v27, %v77_v26 }
  0x3e   :  { %352 = vmatpush1.bf16.msra.mxu0 %v351_v14  ;;  %v377_v32 = vpack.c.bf16 %v181_v29, %v179_v28  ;;  %v180_v33 = vld [vmem:[#allocation7 + $0x10] sm:$0xff]  ;;  %v183_v34 = vld [vmem:[#allocation7 + $0x28] sm:$0xff]  ;;  %v185_v35 = vld [vmem:[#allocation7 + $0x38] sm:$0xff] }
  0x3f   :  { %354 = vmatprep.subr.bf16.mxu0 %v353_v15  ;;  %v379_v37 = vpack.c.bf16 %v180_v33, %v178_v30  ;;  %v381_v38 = vpack.c.bf16 %v185_v35, %v183_v34  ;;  %v182_v39 = vld [vmem:[#allocation7 + $0x20] sm:$0xff]  ;;  %v184_v40 = vld [vmem:[#allocation7 + $0x30] sm:$0xff]  ;;  %v187_v41 = vld [vmem:[#allocation7 + $0x48] sm:$0xff] }
  0x40   :  { %v82_v42 = vld [vmem:[#allocation5 + $0xa8] sm:$0xff]  ;;  %v84_v43 = vld [vmem:[#allocation5 + $0xb8] sm:$0xff]  ;;  %378 = vmatprep.subr.bf16.mxu1 %v377_v32  ;;  %v383_v45 = vpack.c.bf16 %v184_v40, %v182_v39  ;;  %v81_v47 = vld [vmem:[#allocation5 + $0xa0] sm:$0xff] }
  0x41   :  { %v189_v44 = vld [vmem:[#allocation7 + $0x58] sm:$0xff]  ;;  %380 = vmatpush1.bf16.msra.mxu1 %v379_v37  ;;  %v186_v49 = vld [vmem:[#allocation7 + $0x40] sm:$0xff]  ;;  %v188_v50 = vld [vmem:[#allocation7 + $0x50] sm:$0xff]  ;;  %v365_v51 = vpack.c.bf16 %v84_v43, %v82_v42 }
  0x42   :  { %356 = vmatpush1.bf16.msra.mxu0 %v355_v20  ;;  %382 = vmatprep.subr.bf16.mxu1 %v381_v38  ;;  %v385_v48 = vpack.c.bf16 %v189_v44, %v187_v41  ;;  %v83_v52 = vld [vmem:[#allocation5 + $0xb0] sm:$0xff]  ;;  %v191_v53 = vld [vmem:[#allocation7 + $0x68] sm:$0xff]  ;;  %v193_v54 = vld [vmem:[#allocation7 + $0x78] sm:$0xff]  ;;  %v387_v57 = vpack.c.bf16 %v188_v50, %v186_v49 }
  0x43   :  { %358 = vmatprep.subr.bf16.mxu0 %v357_v21  ;;  %v86_v55 = vld [vmem:[#allocation5 + $0xc8] sm:$0xff]  ;;  %v88_v56 = vld [vmem:[#allocation5 + $0xd8] sm:$0xff]  ;;  %v367_v58 = vpack.c.bf16 %v83_v52, %v81_v47  ;;  %v85_v59 = vld [vmem:[#allocation5 + $0xc0] sm:$0xff]  ;;  %v389_v60 = vpack.c.bf16 %v193_v54, %v191_v53 }
  0x44   :  { %v190_v61 = vld [vmem:[#allocation7 + $0x60] sm:$0xff]  ;;  %v192_v62 = vld [vmem:[#allocation7 + $0x70] sm:$0xff]  ;;  %v369_v63 = vpack.c.bf16 %v88_v56, %v86_v55  ;;  %v195_v1 = vld [vmem:[#allocation7 + $0x88] sm:$0xff] }
  0x45   :  { %384 = vmatpush1.bf16.msra.mxu1 %v383_v45  ;;  %v87_v0 = vld [vmem:[#allocation5 + $0xd0] sm:$0xff]  ;;  %v197_v2 = vld [vmem:[#allocation7 + $0x98] sm:$0xff]  ;;  %v90_v3 = vld [vmem:[#allocation5 + $0xe8] sm:$0xff]  ;;  %v391_v5 = vpack.c.bf16 %v192_v62, %v190_v61 }
  0x46   :  { %360 = vmatpush1.bf16.msra.mxu0 %v359_v31  ;;  %386 = vmatprep.subr.bf16.mxu1 %v385_v48  ;;  %v92_v4 = vld [vmem:[#allocation5 + $0xf8] sm:$0xff]  ;;  %v371_v6 = vpack.c.bf16 %v87_v0, %v85_v59  ;;  %v89_v7 = vld [vmem:[#allocation5 + $0xe0] sm:$0xff]  ;;  %v393_v8 = vpack.c.bf16 %v197_v2, %v195_v1  ;;  %v196_v10 = vld [vmem:[#allocation7 + $0x90] sm:$0xff] }
  0x47   :  { %362 = vmatprep.subr.bf16.mxu0 %v361_v36  ;;  %v194_v9 = vld [vmem:[#allocation7 + $0x80] sm:$0xff]  ;;  %v373_v11 = vpack.c.bf16 %v92_v4, %v90_v3  ;;  %v91_v12 = vld [vmem:[#allocation5 + $0xf0] sm:$0xff]  ;;  %v199_v13 = vld [vmem:[#allocation7 + $0xa8] sm:$0xff] }
  0x48   :  { %v201_v14 = vld [vmem:[#allocation7 + $0xb8] sm:$0xff]  ;;  %v395_v15 = vpack.c.bf16 %v196_v10, %v194_v9  ;;  %v375_v16 = vpack.c.bf16 %v91_v12, %v89_v7  ;;  %v198_v18 = vld [vmem:[#allocation7 + $0xa0] sm:$0xff]  ;;  %v200_v19 = vld [vmem:[#allocation7 + $0xb0] sm:$0xff] }
  0x49   :  { %388 = vmatpush1.bf16.msra.mxu1 %v387_v57  ;;  %v397_v17 = vpack.c.bf16 %v201_v14, %v199_v13  ;;  %v203_v20 = vld [vmem:[#allocation7 + $0xc8] sm:$0xff]  ;;  %v205_v21 = vld [vmem:[#allocation7 + $0xd8] sm:$0xff]  ;;  %v399_v22 = vpack.c.bf16 %v200_v19, %v198_v18  ;;  %v202_v25 = vld [vmem:[#allocation7 + $0xc0] sm:$0xff]  ;;  %v95_v18 = vlaneseq }
  0x4a   :  { %364 = vmatpush1.bf16.msra.mxu0 %v363_v46  ;;  %390 = vmatprep.subr.bf16.mxu1 %v389_v60  ;;  %v60_v23 = vld [vmem:[#allocation2] sm:$0xff]  ;;  %v401_v24 = vpack.c.bf16 %v205_v21, %v203_v20  ;;  %v204_v26 = vld [vmem:[#allocation7 + $0xd0] sm:$0xff]  ;;  %v207_v27 = vld [vmem:[#allocation7 + $0xe8] sm:$0xff] }
  0x4b   :  { %366 = vmatprep.subr.bf16.mxu0 %v365_v51  ;;  %v209_v28 = vld [vmem:[#allocation7 + $0xf8] sm:$0xff]  ;;  %v403_v29 = vpack.c.bf16 %v204_v26, %v202_v25  ;;  %v206_v31 = vld [vmem:[#allocation7 + $0xe0] sm:$0xff]  ;;  %v208_v32 = vld [vmem:[#allocation7 + $0xf0] sm:$0xff]  ;;  %v96_v19 = vshrl.u32 %v95_v18, 7 }
  0x4c   :  { %v405_v30 = vpack.c.bf16 %v209_v28, %v207_v27  ;;  %v211_v33 = vld [vmem:[#allocation7 + $0x108] sm:$0xff]  ;;  %v213_v34 = vld [vmem:[#allocation7 + $0x118] sm:$0xff]  ;;  %v407_v35 = vpack.c.bf16 %v208_v32, %v206_v31  ;;  %v210_v37 = vld [vmem:[#allocation7 + $0x100] sm:$0xff] }
  0x4d   :  { %392 = vmatpush1.bf16.msra.mxu1 %v391_v5  ;;  %v409_v36 = vpack.c.bf16 %v213_v34, %v211_v33  ;;  %v212_v38 = vld [vmem:[#allocation7 + $0x110] sm:$0xff]  ;;  %v215_v39 = vld [vmem:[#allocation7 + $0x128] sm:$0xff]  ;;  %v217_v40 = vld [vmem:[#allocation7 + $0x138] sm:$0xff]  ;;  %v97_v20 = vsub.s32 0, %v96_v19 }
  0x4e   :  { %368 = vmatpush1.bf16.msra.mxu0 %v367_v58  ;;  %394 = vmatprep.subr.bf16.mxu1 %v393_v8  ;;  %v411_v41 = vpack.c.bf16 %v212_v38, %v210_v37  ;;  %v413_v42 = vpack.c.bf16 %v217_v40, %v215_v39  ;;  %v214_v43 = vld [vmem:[#allocation7 + $0x120] sm:$0xff]  ;;  %v216_v44 = vld [vmem:[#allocation7 + $0x130] sm:$0xff]  ;;  %v219_v45 = vld [vmem:[#allocation7 + $0x148] sm:$0xff] }
  0x4f   :  { %370 = vmatprep.subr.bf16.mxu0 %v369_v63  ;;  %v221_v46 = vld [vmem:[#allocation7 + $0x158] sm:$0xff]  ;;  %v415_v47 = vpack.c.bf16 %v216_v44, %v214_v43  ;;  %v218_v49 = vld [vmem:[#allocation7 + $0x140] sm:$0xff]  ;;  %v220_v50 = vld [vmem:[#allocation7 + $0x150] sm:$0xff] }
  0x50   :  { %v417_v48 = vpack.c.bf16 %v221_v46, %v219_v45  ;;  %v223_v51 = vld [vmem:[#allocation7 + $0x168] sm:$0xff]  ;;  %v225_v52 = vld [vmem:[#allocation7 + $0x178] sm:$0xff]  ;;  %v419_v53 = vpack.c.bf16 %v220_v50, %v218_v49  ;;  %v222_v55 = vld [vmem:[#allocation7 + $0x160] sm:$0xff] }
  0x51   :  { %396 = vmatpush1.bf16.msra.mxu1 %v395_v15  ;;  %v421_v54 = vpack.c.bf16 %v225_v52, %v223_v51  ;;  %v224_v56 = vld [vmem:[#allocation7 + $0x170] sm:$0xff]  ;;  %v227_v57 = vld [vmem:[#allocation7 + $0x188] sm:$0xff]  ;;  %v229_v58 = vld [vmem:[#allocation7 + $0x198] sm:$0xff] }
  0x52   :  { %372 = vmatpush1.bf16.msra.mxu0 %v371_v6  ;;  %398 = vmatprep.subr.bf16.mxu1 %v397_v17  ;;  %v423_v59 = vpack.c.bf16 %v224_v56, %v222_v55  ;;  %v425_v60 = vpack.c.bf16 %v229_v58, %v227_v57  ;;  %v226_v61 = vld [vmem:[#allocation7 + $0x180] sm:$0xff]  ;;  %v228_v62 = vld [vmem:[#allocation7 + $0x190] sm:$0xff]  ;;  %v231_v63 = vld [vmem:[#allocation7 + $0x1a8] sm:$0xff] }
  0x53   :  { %374 = vmatprep.subr.bf16.mxu0 %v373_v11  ;;  %v233_v0 = vld [vmem:[#allocation7 + $0x1b8] sm:$0xff]  ;;  %v427_v1 = vpack.c.bf16 %v228_v62, %v226_v61  ;;  %v230_v3 = vld [vmem:[#allocation7 + $0x1a0] sm:$0xff]  ;;  %v232_v4 = vld [vmem:[#allocation7 + $0x1b0] sm:$0xff] }
  0x54   :  { %v429_v2 = vpack.c.bf16 %v233_v0, %v231_v63  ;;  %v235_v5 = vld [vmem:[#allocation7 + $0x1c8] sm:$0xff]  ;;  %v237_v6 = vld [vmem:[#allocation7 + $0x1d8] sm:$0xff]  ;;  %v431_v7 = vpack.c.bf16 %v232_v4, %v230_v3  ;;  %v234_v9 = vld [vmem:[#allocation7 + $0x1c0] sm:$0xff] }
  0x55   :  { %400 = vmatpush1.bf16.msra.mxu1 %v399_v22  ;;  %v433_v8 = vpack.c.bf16 %v237_v6, %v235_v5  ;;  %v236_v10 = vld [vmem:[#allocation7 + $0x1d0] sm:$0xff]  ;;  %v239_v12 = vld [vmem:[#allocation7 + $0x1e8] sm:$0xff]  ;;  %v241_v13 = vld [vmem:[#allocation7 + $0x1f8] sm:$0xff]  ;;  %v101_v22 = vsub.s32 1, %v96_v19 }
  0x56   :  { %376 = vmatpush1.bf16.msra.mxu0 %v375_v16  ;;  %402 = vmatprep.subr.bf16.mxu1 %v401_v24  ;;  %v435_v11 = vpack.c.bf16 %v236_v10, %v234_v9  ;;  %v437_v14 = vpack.c.bf16 %v241_v13, %v239_v12  ;;  %v238_v15 = vld [vmem:[#allocation7 + $0x1e0] sm:$0xff]  ;;  %v240_v16 = vld [vmem:[#allocation7 + $0x1f0] sm:$0xff]  ;;  %v93_v21 = vld [vmem:[%s641_s2] sm:$0x3]  ;;  %s548_s2 = smov [#allocation8]  }
  0x57   :  { %v439_v17 = vpack.c.bf16 %v240_v16, %v238_v15  ;;  %v102_v24 = vrot.slane %v93_v21, %v101_v22  ;;  %v242_v31 = vld [vmem:[%s643_s4] sm:$0x3]  ;;  %s335_s7 = sshll.u32 %s548_s2, 4  ;;  %s336_s7 = int_to_ptr.vmem [resolvable:$true] %s335_s7 }
  0x58   :  { %v247_v32 = vrot.slane %v242_v31, %v97_v20  ;;  %v251_v33 = vrot.slane %v242_v31, %v101_v22  ;;  %s514_s8 = scalar_lea.vmem %s336_s7, 256  ;;  %p519_p11 = scmp.lt.s32.totalorder %s336_s7, %s336_s7 }
  0x59   :  { %170 = vmatmul.mubr.f32.vlgmr.msra.gmra.mrb[0].mxu0 %v60_v23  ;;  %404 = vmatpush1.bf16.msra.mxu1 %v403_v29  ;;  %v98_v23 = vrot.slane %v93_v21, %v97_v20  ;;  %p515_p10 = scmp.ne.s32.totalorder %s336_s7, %s514_s8  ;;  %p520_p12 = scmp.lt.s32.totalorder %s514_s8, %s514_s8 }
  0x5a   :  { %406 = vmatprep.subr.bf16.mxu1 %v405_v30 }
  0x5b   :  { %p521_p13 = por %p520_p12, %p519_p11 }
  0x5d   :  { %408 = vmatpush1.bf16.msra.mxu1 %v407_v35  ;;  %p522_p0 = pnand %p521_p13, %p515_p10 }
  0x5e   :  { %410 = vmatprep.subr.bf16.mxu1 %v409_v36 }
  0x61   :  { %412 = vmatpush1.bf16.msra.mxu1 %v411_v41 }
  0x62   :  { %414 = vmatprep.subr.bf16.mxu1 %v413_v42 }
  0x65   :  { %416 = vmatpush1.bf16.msra.mxu1 %v415_v47 }
  0x66   :  { %418 = vmatprep.subr.bf16.mxu1 %v417_v48 }
  0x69   :  { %420 = vmatpush1.bf16.msra.mxu1 %v419_v53 }
  0x6a   :  { %422 = vmatprep.subr.bf16.mxu1 %v421_v54 }
  0x6d   :  { %424 = vmatpush1.bf16.msra.mxu1 %v423_v59 }
  0x6e   :  { %426 = vmatprep.subr.bf16.mxu1 %v425_v60 }
  0x71   :  { %428 = vmatpush1.bf16.msra.mxu1 %v427_v1 }
  0x72   :  { %430 = vmatprep.subr.bf16.mxu1 %v429_v2 }
  0x75   :  { %432 = vmatpush1.bf16.msra.mxu1 %v431_v7 }
  0x76   :  { %434 = vmatprep.subr.bf16.mxu1 %v433_v8 }
  0x79   :  { %436 = vmatpush1.bf16.msra.mxu1 %v435_v11 }
  0x7a   :  { %438 = vmatprep.subr.bf16.mxu1 %v437_v14 }
  0x7d   :  { %440 = vmatpush1.bf16.msra.mxu1 %v439_v17 }
 0x12c   :  { %v171_v25 = vpop.f32.mrb[0].mxu0 }
 0x12d   :  { %v172_v26 = vadd.f32 %v171_v25, %v98_v23  ;;  %v173_v27 = vpop.f32.mrb[1].mxu0 }
 0x12e   :  { %v174_v28 = vadd.f32 %v173_v27, %v102_v24 }
 0x12f   :  { %v176_v30 = vmax.f32 %v172_v26, 0.0 }
 0x130   :  { %v177_v29 = vmax.f32 %v174_v28, 0.0 }
 0x132   :  { %318 = vmatprep.mubr.f32.mxu1 %v177_v29 }
 0x133   :  { %319 = vmatmul.mubr.f32.vlgmr.msra.gmra.mrb[0].mxu1 %v176_v30 }
 0x206   :  { %v320_v34 = vpop.f32.mrb[0].mxu1 }
 0x207   :  { %v321_v35 = vadd.f32 %v320_v34, %v247_v32  ;;  %v322_v36 = vpop.f32.mrb[1].mxu1 }
 0x208   :  { %v323_v37 = vadd.f32 %v322_v36, %v251_v33 }
 0x209   :  { %v325_v38 = vmax.f32 %v321_v35, 0.0 }
 0x20a   :  { %v326_v39 = vmax.f32 %v323_v37, 0.0 }
 0x20b   :  { %327 = vst [vmem:[#allocation8] sm:$0xff] %v325_v38 }
 0x20c   :  { %328 = vst [vmem:[#allocation8 + $0x8] sm:$0xff] %v326_v39 }
 0x20d   :  { %525 = shalt.err (!%p522_p0)
}
 0x20e   :  { %s526_s10 = scalar_lea.hbm %s644_s5, 256 }
 0x20f   :  { %p527_p1 = scmp.ne.s32.totalorder %s644_s5, %s526_s10  ;;  %p530_p2 = scmp.lt.u32.totalorder %s526_s10, %s644_s5 }
 0x211   :  { %p532_p3 = pnand %p530_p2, %p527_p1 }
 0x213   :  { %535 = shalt.err (!%p532_p3)
}
 0x214   :  { %338 = dma.vmem_to_hbm [thread:$0]  %s336_s7, 256, %s644_s5, [#allocation4]  }
 0x215   :  { %540 = dma.done.wait [#allocation4], 256  }
 0x216   :  { %541 = vsyncadd [#allocation4], 4294967040 }
 0x217   :  { %342 = vsyncpa [#allocation3], 1 }
 0x218   :  { %343 = vsyncpa [#allocation6], 1 }
 0x219   :  { %344 = vsyncpa [#allocation4], 1 }

</bundles_post_ra>
